<compile_context>
chip_gen: v6e
topology: v6e:2x2x1
jax: 0.10.0
libtpu: 0.0.40
codegen_flags: <defaults>
</compile_context>

<pallas_src>
import jax
import jax.numpy as jnp
from jax.experimental import pallas as pl
from jax.experimental.pallas import tpu as pltpu


def _add_kernel(params_ref, update_ref, out_ref):
    # Elementwise add on the current VMEM tile (VPU).
    out_ref[...] = params_ref[...] + update_ref[...]


_SMALL_BYTES = 512 * 1024             # below this: single full-extent block
_TARGET_BLOCK_BYTES = 2 * 1024 * 1024  # ~2 MiB per input block -> HBM roofline,
                                       # 3 arrays x 2 bufs = 12 MiB VMEM (fits all gens)
_LANE_CANDIDATES = (4096, 2048, 1024, 512, 256, 128)


def _round_up(x: int, m: int) -> int:
    return ((x + m - 1) // m) * m


def _row_align(itemsize: int) -> int:
    # Sublane tiling: f32 -> 8, bf16/f16 -> 16, int8/fp8 -> 32.
    return {4: 8, 2: 16, 1: 32}.get(itemsize, 8)


def model_forward(params: jax.Array, update: jax.Array) -> jax.Array:
    """Pallas implementation of Model.forward(): params + update."""
    assert params.shape == update.shape and params.dtype == update.dtype
    orig_shape = params.shape
    dtype = params.dtype
    total = params.size
    itemsize = jnp.dtype(dtype).itemsize

    # ---------- small path: one full-extent block, one DMA in/out ----------
    if total * itemsize <= _SMALL_BYTES:
        return pl.pallas_call(
            _add_kernel,
            out_shape=jax.ShapeDtypeStruct(orig_shape, dtype),
        )(params, update)

    # ---------- large path: wide lane-dense slab, ~2 MiB blocks ----------
    flat_p = params.reshape(-1)
    flat_u = update.reshape(-1)

    # Pick the widest lane extent that divides the blob; otherwise pad to 128.
    lanes = next((c for c in _LANE_CANDIDATES if total % c == 0), None)
    padded_total = total
    if lanes is None:
        lanes = 128
        padded_total = _round_up(total, lanes)
        pad = padded_total - total
        flat_p = jnp.pad(flat_p, (0, pad))
        flat_u = jnp.pad(flat_u, (0, pad))

    rows = padded_total // lanes
    row_align = _row_align(itemsize)

    # Block rows sized for ~2 MiB per input block, aligned to the sublane tiling.
    block_rows = max(row_align, _TARGET_BLOCK_BYTES // (lanes * itemsize))
    block_rows = (block_rows // row_align) * row_align
    block_rows = min(block_rows, _round_up(rows, row_align))

    grid = (pl.cdiv(rows, block_rows),)  # edge block (if any) is masked by Pallas

    p2 = flat_p.reshape(rows, lanes)
    u2 = flat_u.reshape(rows, lanes)

    out2 = pl.pallas_call(
        _add_kernel,
        out_shape=jax.ShapeDtypeStruct((rows, lanes), dtype),
        grid_spec=pltpu.PrefetchScalarGridSpec(
            num_scalar_prefetch=0,
            grid=grid,
            in_specs=[
                pl.BlockSpec((block_rows, lanes), lambda i: (i, 0)),
                pl.BlockSpec((block_rows, lanes), lambda i: (i, 0)),
            ],
            out_specs=pl.BlockSpec((block_rows, lanes), lambda i: (i, 0)),
        ),
        compiler_params=pltpu.CompilerParams(
            dimension_semantics=("parallel",),  # megacore / v7x 2-TC sharding
        ),
    )(p2, u2)

    out_flat = out2.reshape(-1)
    if padded_total != total:
        out_flat = out_flat[:total]
    return out_flat.reshape(orig_shape)


if __name__ == "__main__":
    key = jax.random.PRNGKey(0)
    k1, k2, k3, k4 = jax.random.split(key, 4)

    # Primary check: small parameter blob matching the module's intended use
    # (B=2, C=4, H=16, W=16) -> 2048 elements, takes the single-block fast path.
    shape = (2, 4, 16, 16)
    params = jax.random.normal(k1, shape, dtype=jnp.float32)
    update = jax.random.uniform(k2, shape, dtype=jnp.float32)  # torch.rand_like -> U[0,1)

    out = jax.block_until_ready(model_forward(params, update))
    ref = params + update
    assert out.shape == ref.shape and out.dtype == ref.dtype
    assert jnp.allclose(out, ref, atol=1e-6, rtol=1e-6)

    # Secondary check: larger blob to exercise the tiled, bandwidth-bound path
    # (8 MiB f32 -> lanes=4096, 2 MiB blocks, grid=(4,), both TCs active on v7x).
    big_shape = (16, 8, 128, 128)
    big_p = jax.random.normal(k3, big_shape, dtype=jnp.float32)
    big_u = jax.random.uniform(k4, big_shape, dtype=jnp.float32)
    big_out = jax.block_until_ready(model_forward(big_p, big_u))
    assert jnp.allclose(big_out, big_p + big_u, atol=1e-6, rtol=1e-6)

    print("KERNEL_OK")
</pallas_src>

<mosaic_0001>
module attributes {stable_mosaic.version = 11 : i64} {
  func.func @_add_kernel(%arg0: memref<2x4x16x16xf32, #tpu.memory_space<vmem>>, %arg1: memref<2x4x16x16xf32, #tpu.memory_space<vmem>>, %arg2: memref<2x4x16x16xf32, #tpu.memory_space<vmem>>) attributes {dimension_semantics = [], scalar_prefetch = 0 : i64, scratch_operands = 0 : i64, tpu.core_type = #tpu.core_type<tc>} {
    %c0 = arith.constant 0 : index
    %c0_0 = arith.constant 0 : index
    %c0_1 = arith.constant 0 : index
    %c0_2 = arith.constant 0 : index
    %0 = vector.load %arg0[%c0, %c0_0, %c0_1, %c0_2] : memref<2x4x16x16xf32, #tpu.memory_space<vmem>>, vector<2x4x16x16xf32>
    %c0_3 = arith.constant 0 : index
    %c0_4 = arith.constant 0 : index
    %c0_5 = arith.constant 0 : index
    %c0_6 = arith.constant 0 : index
    %1 = vector.load %arg1[%c0_3, %c0_4, %c0_5, %c0_6] : memref<2x4x16x16xf32, #tpu.memory_space<vmem>>, vector<2x4x16x16xf32>
    %2 = arith.addf %0, %1 : vector<2x4x16x16xf32>
    %c0_7 = arith.constant 0 : index
    %c0_8 = arith.constant 0 : index
    %c0_9 = arith.constant 0 : index
    %c0_10 = arith.constant 0 : index
    %3 = vector.load %arg2[%c0_7, %c0_8, %c0_9, %c0_10] : memref<2x4x16x16xf32, #tpu.memory_space<vmem>>, vector<2x4x16x16xf32>
    tpu.vector_store %arg2[%c0_7, %c0_8, %c0_9, %c0_10], %2 {strides = array<i32>} : memref<2x4x16x16xf32, #tpu.memory_space<vmem>>, vector<2x4x16x16xf32>,
    return
  }
}

</mosaic_0001>

<bundles_post_ra>
// kernel: tpu_custom_call.1
= control target key start
LH: loop header
LB: loop body
LE: loop exit
PB: predicated region body
PF: predicated region fallthrough
CT: control target
= control target key end

     0   :  { %7 = vsyncpa [#allocation3], 0  ;;  %s248_s0 = inlined_call_operand.hbm [shape: f32[2,4,16,16], index: 0, kind: input, shape index: {}]   ;;  %s249_s1 = inlined_call_operand.hbm [shape: f32[2,4,16,16], index: 1, kind: input, shape index: {}]   ;;  %s250_s2 = inlined_call_operand.hbm [shape: f32[2,4,16,16], index: 2, kind: output, shape index: {}]  }
   0x1   :  { %8 = vsyncpa [#allocation6], 0 }
   0x2   :  { %9 = vsyncpa [#allocation4], 0  ;;  %s194_s9 = smov [#allocation2]  }
   0x3   :  { %s15_s10 = sshll.u32 %s194_s9, 4  ;;  %s16_s10 = int_to_ptr.vmem [resolvable:$true] %s15_s10 }
   0x4   :  { %s136_s11 = scalar_lea.vmem %s16_s10, 2048  ;;  %p141_p1 = scmp.lt.s32.totalorder %s16_s10, %s16_s10 }
   0x5   :  { %p137_p0 = scmp.ne.s32.totalorder %s16_s10, %s136_s11  ;;  %p142_p2 = scmp.lt.s32.totalorder %s136_s11, %s136_s11 }
   0x7   :  { %p143_p3 = por %p142_p2, %p141_p1 }
   0x9   :  { %p144_p4 = pnand %p143_p3, %p137_p0 }
   0xb   :  { %147 = shalt.err (!%p144_p4)
}
   0xc   :  { %s195_s12 = smov 128   ;;  %s196_s13 = smov 8  }
   0xd   :  { %21 = dma.hbm_to_vmem [thread:$0]  %s248_s0, 2048, %s16_s10, [#allocation3], %s195_s12, %s195_s12, %s196_s13  }
   0xe   :  { %s197_s16 = smov [#allocation5]  }
   0xf   :  { %s27_s17 = sshll.u32 %s197_s16, 4  ;;  %s28_s17 = int_to_ptr.vmem [resolvable:$true] %s27_s17 }
  0x10   :  { %s156_s18 = scalar_lea.vmem %s28_s17, 2048  ;;  %p161_p6 = scmp.lt.s32.totalorder %s28_s17, %s28_s17 }
  0x11   :  { %p157_p5 = scmp.ne.s32.totalorder %s28_s17, %s156_s18  ;;  %p162_p7 = scmp.lt.s32.totalorder %s156_s18, %s156_s18 }
  0x13   :  { %p163_p8 = por %p162_p7, %p161_p6 }
  0x15   :  { %p164_p9 = pnand %p163_p8, %p157_p5 }
  0x17   :  { %167 = shalt.err (!%p164_p9)
}
  0x18   :  { %33 = dma.hbm_to_vmem [thread:$0]  %s249_s1, 2048, %s28_s17, [#allocation6], %s195_s12, %s195_s12, %s196_s13  }
  0x19   :  { %188 = dma.done.wait [#allocation3], 2048  }
  0x1a   :  { %189 = vsyncadd [#allocation3], 4294965248 }
  0x1b   :  { %190 = dma.done.wait [#allocation6], 2048  }
  0x1c   :  { %191 = vsyncadd [#allocation6], 4294965248  ;;  %v40_v0 = vld [vmem:[#allocation2] sm:$0xff]  ;;  %vm88_vm0 = vcmask 130048   ;;  %v41_v2 = vld [vmem:[#allocation2 + $0x8] sm:$0xff]  ;;  %s198_s0 = smov [#allocation7]  }
  0x1d   :  { %v56_v1 = vld [vmem:[#allocation5] sm:$0xff]  ;;  %v57_v4 = vld [vmem:[#allocation5 + $0x8] sm:$0xff]  ;;  %v42_v5 = vld [vmem:[#allocation2 + $0x10] sm:$0xff]  ;;  %s110_s1 = sshll.u32 %s198_s0, 4  ;;  %s111_s1 = int_to_ptr.vmem [resolvable:$true] %s110_s1 }
  0x1e   :  { %v72_v3 = vadd.f32 %v56_v1, %v40_v0  ;;  %v58_v6 = vld [vmem:[#allocation5 + $0x10] sm:$0xff]  ;;  %v73_v7 = vadd.f32 %v57_v4, %v41_v2  ;;  %v43_v9 = vld [vmem:[#allocation2 + $0x18] sm:$0xff]  ;;  %v44_v11 = vld [vmem:[#allocation2 + $0x20] sm:$0xff]  ;;  %s168_s21 = scalar_lea.vmem %s111_s1, 2048  ;;  %p173_p11 = scmp.lt.s32.totalorder %s111_s1, %s111_s1 }
  0x1f   :  { %v74_v8 = vadd.f32 %v58_v6, %v42_v5  ;;  %v59_v10 = vld [vmem:[#allocation5 + $0x18] sm:$0xff]  ;;  %v60_v13 = vld [vmem:[#allocation5 + $0x20] sm:$0xff]  ;;  %v45_v14 = vld [vmem:[#allocation2 + $0x28] sm:$0xff]  ;;  %p169_p10 = scmp.ne.s32.totalorder %s111_s1, %s168_s21  ;;  %p174_p12 = scmp.lt.s32.totalorder %s168_s21, %s168_s21 }
  0x20   :  { %89 = vst.msk [vmem:[#allocation7] sm:$0xff] %vm88_vm0, %v72_v3  ;;  %v75_v12 = vadd.f32 %v59_v10, %v43_v9  ;;  %v61_v15 = vld [vmem:[#allocation5 + $0x28] sm:$0xff]  ;;  %90 = vst.msk [vmem:[#allocation7 + $0x8] sm:$0xff] %vm88_vm0, %v73_v7  ;;  %v76_v16 = vadd.f32 %v60_v13, %v44_v11  ;;  %v46_v18 = vld [vmem:[#allocation2 + $0x30] sm:$0xff] }
  0x21   :  { %91 = vst.msk [vmem:[#allocation7 + $0x10] sm:$0xff] %vm88_vm0, %v74_v8  ;;  %v77_v17 = vadd.f32 %v61_v15, %v45_v14  ;;  %v62_v19 = vld [vmem:[#allocation5 + $0x30] sm:$0xff]  ;;  %v47_v20 = vld [vmem:[#allocation2 + $0x38] sm:$0xff]  ;;  %v48_v23 = vld [vmem:[#allocation2 + $0x40] sm:$0xff]  ;;  %p175_p13 = por %p174_p12, %p173_p11 }
  0x22   :  { %92 = vst.msk [vmem:[#allocation7 + $0x18] sm:$0xff] %vm88_vm0, %v75_v12  ;;  %v78_v21 = vadd.f32 %v62_v19, %v46_v18  ;;  %v63_v22 = vld [vmem:[#allocation5 + $0x38] sm:$0xff]  ;;  %v64_v24 = vld [vmem:[#allocation5 + $0x40] sm:$0xff]  ;;  %93 = vst.msk [vmem:[#allocation7 + $0x20] sm:$0xff] %vm88_vm0, %v76_v16 }
  0x23   :  { %94 = vst.msk [vmem:[#allocation7 + $0x28] sm:$0xff] %vm88_vm0, %v77_v17  ;;  %v79_v25 = vadd.f32 %v63_v22, %v47_v20  ;;  %v80_v26 = vadd.f32 %v64_v24, %v48_v23  ;;  %v49_v27 = vld [vmem:[#allocation2 + $0x48] sm:$0xff]  ;;  %v50_v29 = vld [vmem:[#allocation2 + $0x50] sm:$0xff]  ;;  %v51_v32 = vld [vmem:[#allocation2 + $0x58] sm:$0xff]  ;;  %p176_p0 = pnand %p175_p13, %p169_p10 }
  0x24   :  { %v65_v28 = vld [vmem:[#allocation5 + $0x48] sm:$0xff]  ;;  %95 = vst.msk [vmem:[#allocation7 + $0x30] sm:$0xff] %vm88_vm0, %v78_v21  ;;  %v66_v31 = vld [vmem:[#allocation5 + $0x50] sm:$0xff]  ;;  %v67_v33 = vld [vmem:[#allocation5 + $0x58] sm:$0xff] }
  0x25   :  { %v81_v30 = vadd.f32 %v65_v28, %v49_v27  ;;  %96 = vst.msk [vmem:[#allocation7 + $0x38] sm:$0xff] %vm88_vm0, %v79_v25  ;;  %97 = vst.msk [vmem:[#allocation7 + $0x40] sm:$0xff] %vm88_vm0, %v80_v26  ;;  %v82_v34 = vadd.f32 %v66_v31, %v50_v29  ;;  %v83_v35 = vadd.f32 %v67_v33, %v51_v32  ;;  %v52_v36 = vld [vmem:[#allocation2 + $0x60] sm:$0xff]  ;;  %v53_v38 = vld [vmem:[#allocation2 + $0x68] sm:$0xff] }
  0x26   :  { %v68_v37 = vld [vmem:[#allocation5 + $0x60] sm:$0xff]  ;;  %v69_v40 = vld [vmem:[#allocation5 + $0x68] sm:$0xff]  ;;  %v54_v41 = vld [vmem:[#allocation2 + $0x70] sm:$0xff] }
  0x27   :  { %98 = vst.msk [vmem:[#allocation7 + $0x48] sm:$0xff] %vm88_vm0, %v81_v30  ;;  %v84_v39 = vadd.f32 %v68_v37, %v52_v36  ;;  %v70_v42 = vld [vmem:[#allocation5 + $0x70] sm:$0xff]  ;;  %99 = vst.msk [vmem:[#allocation7 + $0x50] sm:$0xff] %vm88_vm0, %v82_v34  ;;  %v85_v43 = vadd.f32 %v69_v40, %v53_v38  ;;  %v55_v45 = vld [vmem:[#allocation2 + $0x78] sm:$0xff] }
  0x28   :  { %100 = vst.msk [vmem:[#allocation7 + $0x58] sm:$0xff] %vm88_vm0, %v83_v35  ;;  %v86_v44 = vadd.f32 %v70_v42, %v54_v41  ;;  %v71_v46 = vld [vmem:[#allocation5 + $0x78] sm:$0xff] }
  0x29   :  { %101 = vst.msk [vmem:[#allocation7 + $0x60] sm:$0xff] %vm88_vm0, %v84_v39  ;;  %v87_v47 = vadd.f32 %v71_v46, %v55_v45  ;;  %102 = vst.msk [vmem:[#allocation7 + $0x68] sm:$0xff] %vm88_vm0, %v85_v43 }
  0x2a   :  { %103 = vst.msk [vmem:[#allocation7 + $0x70] sm:$0xff] %vm88_vm0, %v86_v44 }
  0x2b   :  { %104 = vst.msk [vmem:[#allocation7 + $0x78] sm:$0xff] %vm88_vm0, %v87_v47 }
  0x2c   :  { %179 = shalt.err (!%p176_p0)
}
  0x2d   :  { %116 = dma.vmem_to_hbm [thread:$0]  %s111_s1, 2048, %s250_s2, [#allocation4], %s195_s12, %s195_s12, %s196_s13  }
  0x2e   :  { %192 = dma.done.wait [#allocation4], 2048  }
  0x2f   :  { %193 = vsyncadd [#allocation4], 4294965248 }
  0x30   :  { %120 = vsyncpa [#allocation3], 1 }
  0x31   :  { %121 = vsyncpa [#allocation6], 1 }
  0x32   :  { %122 = vsyncpa [#allocation4], 1 }

</bundles_post_ra>
